<compile_context>
chip_gen: v7x
topology: tpu7x:2x2x1
jax: 0.10.0
libtpu: 0.0.40
codegen_flags: <defaults>
</compile_context>

<pallas_src>
import jax
import jax.numpy as jnp
from jax.experimental import pallas as pl
from jax.experimental.pallas import tpu as pltpu


def _reverse_kl_kernel(q_ref, p_ref, out_ref, acc_ref):
    """One (tile_b, tile_v) tile: accumulate per-lane-column partial sums over the
    V (reduction, innermost/'arbitrary') grid axis; emit one scalar per B-tile."""
    j = pl.program_id(1)

    @pl.when(j == 0)
    def _init():
        acc_ref[...] = jnp.zeros_like(acc_ref)

    q = q_ref[...].astype(jnp.float32)
    p = p_ref[...].astype(jnp.float32)
    # pointwise KL(log_target=True): exp(target) * (target - input); target=q, input=p.
    # Inner-loop work stays on VPU/EUP (+ one sublane fold on XLU); the cross-lane
    # reduce + tiny scalar store happen once per B-tile in the finalize branch.
    acc_ref[...] += jnp.sum(jnp.exp(q) * (q - p), axis=0, keepdims=True)

    @pl.when(j == pl.num_programs(1) - 1)
    def _finalize():
        out_ref[...] = jnp.sum(acc_ref[...], keepdims=True).reshape(1, 1, 1)


def _pick_tile(dim, unit, cap):
    """Return (tile, padded_dim).

    tile is a multiple of `unit` (or the full dim, which is always a legal block),
    padded_dim is the smallest multiple of tile >= dim.  Prefers tiles that divide
    `dim` exactly so no padding copy is needed."""
    cap = max(unit, (cap // unit) * unit)
    if dim <= cap:
        return dim, dim                     # single full-extent block (always legal)
    t = cap
    while t >= unit:                        # largest aligned exact divisor, if any
        if dim % t == 0:
            return t, dim
        t -= unit
    tile = cap                              # no exact divisor -> pad up to tile multiple
    padded = ((dim + tile - 1) // tile) * tile
    return tile, padded


def reverse_kl(q, p, *, vmem_tile_bytes=2 * 1024 * 1024,
               vmem_limit_bytes=48 * 1024 * 1024):
    """Pallas TPU implementation of ReverseKL.forward(q, p).

    q, p may be float32 or bfloat16 log-probs; bf16 is upcast inside the kernel
    (do NOT pre-cast to f32 in the caller — the kernel is HBM-bandwidth bound,
    so reading bf16 halves the traffic)."""
    assert q.shape == p.shape and q.ndim == 2, "expect (batch, classes) log-probs"
    B, V = q.shape
    itemsize = jnp.dtype(q.dtype).itemsize
    sub_unit = 16 if itemsize == 2 else 8   # min sublane tile: f32 -> 8, bf16 -> 16

    # Lane (V) axis: take the full class dim per block when it fits the per-input
    # budget (collapses the reduction axis -> effectively a 1-D grid over B);
    # otherwise the largest aligned tile under the budget.
    max_tv = max(128, (vmem_tile_bytes // (sub_unit * itemsize)) // 128 * 128)
    tile_v, v_pad = _pick_tile(V, 128, max_tv)

    # Sublane (B) axis: largest aligned tile keeping each input tile near
    # ~vmem_tile_bytes (past the ~0.35us/step overhead knee, while 2 inputs x 2
    # pipeline buffers stay well inside v7x's 64 MiB VMEM).
    max_tb = max(sub_unit,
                 (vmem_tile_bytes // (tile_v * itemsize)) // sub_unit * sub_unit)
    tile_b, b_pad = _pick_tile(B, sub_unit, max_tb)

    if (b_pad, v_pad) != (B, V):
        # Zero padding is exact: exp(0) * (0 - 0) == 0 contribution.
        q = jnp.pad(q, ((0, b_pad - B), (0, v_pad - V)))
        p = jnp.pad(p, ((0, b_pad - B), (0, v_pad - V)))

    num_bt = b_pad // tile_b
    num_vt = v_pad // tile_v

    partials = pl.pallas_call(
        _reverse_kl_kernel,
        out_shape=jax.ShapeDtypeStruct((num_bt, 1, 1), jnp.float32),
        grid_spec=pltpu.PrefetchScalarGridSpec(
            num_scalar_prefetch=0,
            grid=(num_bt, num_vt),  # reduction (V) axis innermost
            in_specs=[
                pl.BlockSpec((tile_b, tile_v), lambda i, j: (i, j)),
                pl.BlockSpec((tile_b, tile_v), lambda i, j: (i, j)),
            ],
            # One scalar partial per B-tile; distinct output blocks per i so the B
            # axis can be 'parallel' (v7x megacore) without racing a shared scalar.
            out_specs=pl.BlockSpec((1, 1, 1), lambda i, j: (i, 0, 0)),
            scratch_shapes=[pltpu.VMEM((1, tile_v), jnp.float32)],
        ),
        compiler_params=pltpu.CompilerParams(
            dimension_semantics=("parallel", "arbitrary"),
            vmem_limit_bytes=vmem_limit_bytes,
        ),
    )(q, p)

    return jnp.sum(partials) / jnp.float32(B)


if __name__ == "__main__":
    key = jax.random.PRNGKey(0)
    k1, k2, k3, k4, k5, k6 = jax.random.split(key, 6)

    # 1) small single-block case: rows = batch, cols = vocab/classes
    B, V = 8, 256
    q = jax.nn.log_softmax(jax.random.normal(k1, (B, V), dtype=jnp.float32), axis=-1)
    p = jax.nn.log_softmax(jax.random.normal(k2, (B, V), dtype=jnp.float32), axis=-1)
    loss = jax.block_until_ready(reverse_kl(q, p))
    ref = jnp.sum(jnp.exp(q) * (q - p)) / B
    assert jnp.allclose(loss, ref, rtol=1e-5, atol=1e-5), (loss, ref)

    # 2) multi-tile grid on both axes (parallel B-tiles + V-axis accumulator path),
    #    forced by a tiny per-input tile budget.
    B2, V2 = 64, 2048
    q2 = jax.nn.log_softmax(jax.random.normal(k3, (B2, V2), dtype=jnp.float32), axis=-1)
    p2 = jax.nn.log_softmax(jax.random.normal(k4, (B2, V2), dtype=jnp.float32), axis=-1)
    loss2 = jax.block_until_ready(reverse_kl(q2, p2, vmem_tile_bytes=16 * 1024))
    ref2 = jnp.sum(jnp.exp(q2) * (q2 - p2)) / B2
    assert jnp.allclose(loss2, ref2, rtol=1e-5, atol=1e-5), (loss2, ref2)

    # 3) non-aligned / non-divisible shape exercising the zero-padding fallback.
    B3, V3 = 20, 1000
    q3 = jax.nn.log_softmax(jax.random.normal(k5, (B3, V3), dtype=jnp.float32), axis=-1)
    p3 = jax.nn.log_softmax(jax.random.normal(k6, (B3, V3), dtype=jnp.float32), axis=-1)
    loss3 = jax.block_until_ready(reverse_kl(q3, p3, vmem_tile_bytes=16 * 1024))
    ref3 = jnp.sum(jnp.exp(q3) * (q3 - p3)) / B3
    assert jnp.allclose(loss3, ref3, rtol=1e-5, atol=1e-5), (loss3, ref3)

    print("KERNEL_OK")
</pallas_src>

<mosaic_0001>
module attributes {stable_mosaic.version = 11 : i64} {
  func.func @_reverse_kl_kernel(%arg0: i32, %arg1: i32, %arg2: memref<8x256xf32, #tpu.memory_space<vmem>>, %arg3: memref<8x256xf32, #tpu.memory_space<vmem>>, %arg4: memref<1x1x1xf32, #tpu.memory_space<vmem>>, %arg5: memref<1x256xf32, #tpu.memory_space<vmem>>) attributes {dimension_semantics = [#tpu.dimension_semantics<parallel>, #tpu.dimension_semantics<arbitrary>], iteration_bounds = array<i64: 1, 1>, scalar_prefetch = 0 : i64, scratch_operands = 1 : i64, tpu.core_type = #tpu.core_type<tc>, window_params = [{transform_indices = @transform_0, window_bounds = array<i64: 8, 256>}, {transform_indices = @transform_1, window_bounds = array<i64: 8, 256>}, {transform_indices = @transform_2, window_bounds = array<i64: 1, 1, 1>}]} {
    %c0_i32 = arith.constant 0 : i32
    %0 = arith.cmpi eq, %arg1, %c0_i32 : i32
    %1 = arith.extui %0 : i1 to i32
    %c0_i32_0 = arith.constant 0 : i32
    %2 = arith.cmpi ne, %1, %c0_i32_0 : i32
    scf.if %2 {
      %cst_10 = arith.constant 0.000000e+00 : f32
      %16 = vector.broadcast %cst_10 : f32 to vector<1x256xf32>
      %c0_11 = arith.constant 0 : index
      %c0_12 = arith.constant 0 : index
      %17 = vector.load %arg5[%c0_11, %c0_12] : memref<1x256xf32, #tpu.memory_space<vmem>>, vector<1x256xf32>
      tpu.vector_store %arg5[%c0_11, %c0_12], %16 {strides = array<i32>} : memref<1x256xf32, #tpu.memory_space<vmem>>, vector<1x256xf32>,
    } else {
    }
    %c0 = arith.constant 0 : index
    %c0_1 = arith.constant 0 : index
    %3 = vector.load %arg2[%c0, %c0_1] : memref<8x256xf32, #tpu.memory_space<vmem>>, vector<8x256xf32>
    %c0_2 = arith.constant 0 : index
    %c0_3 = arith.constant 0 : index
    %4 = vector.load %arg3[%c0_2, %c0_3] : memref<8x256xf32, #tpu.memory_space<vmem>>, vector<8x256xf32>
    %c0_4 = arith.constant 0 : index
    %c0_5 = arith.constant 0 : index
    %5 = vector.load %arg5[%c0_4, %c0_5] : memref<1x256xf32, #tpu.memory_space<vmem>>, vector<1x256xf32>
    %6 = math.exp %3 : vector<8x256xf32>
    %7 = arith.subf %3, %4 : vector<8x256xf32>
    %8 = arith.mulf %6, %7 : vector<8x256xf32>
    %cst = arith.constant dense<0.000000e+00> : vector<256xf32>
    %9 = vector.multi_reduction <add>, %8, %cst [0] : vector<8x256xf32> to vector<256xf32>
    %10 = vector.shape_cast %9 : vector<256xf32> to vector<1x256xf32>
    %11 = arith.addf %5, %10 : vector<1x256xf32>
    %c0_6 = arith.constant 0 : index
    %c0_7 = arith.constant 0 : index
    %12 = vector.load %arg5[%c0_6, %c0_7] : memref<1x256xf32, #tpu.memory_space<vmem>>, vector<1x256xf32>
    tpu.vector_store %arg5[%c0_6, %c0_7], %11 {strides = array<i32>} : memref<1x256xf32, #tpu.memory_space<vmem>>, vector<1x256xf32>,
    %c0_i32_8 = arith.constant 0 : i32
    %13 = arith.cmpi eq, %arg1, %c0_i32_8 : i32
    %14 = arith.extui %13 : i1 to i32
    %c0_i32_9 = arith.constant 0 : i32
    %15 = arith.cmpi ne, %14, %c0_i32_9 : i32
    scf.if %15 {
      %c0_10 = arith.constant 0 : index
      %c0_11 = arith.constant 0 : index
      %16 = vector.load %arg5[%c0_10, %c0_11] : memref<1x256xf32, #tpu.memory_space<vmem>>, vector<1x256xf32>
      %17 = vector.shape_cast %16 : vector<1x256xf32> to vector<1x1x256xf32>
      %cst_12 = arith.constant dense<0.000000e+00> : vector<1xf32>
      %18 = vector.multi_reduction <add>, %17, %cst_12 [1, 2] : vector<1x1x256xf32> to vector<1xf32>
      %19 = vector.shape_cast %18 : vector<1xf32> to vector<1x1x1xf32>
      %20 = vector.extract %19[0, 0, 0] : f32 from vector<1x1x1xf32>
      %21 = vector.broadcast %20 : f32 to vector<1x1xf32>
      %22 = vector.shape_cast %21 : vector<1x1xf32> to vector<1x1x1xf32>
      %c0_13 = arith.constant 0 : index
      %c0_14 = arith.constant 0 : index
      %c0_15 = arith.constant 0 : index
      %23 = vector.load %arg4[%c0_13, %c0_14, %c0_15] : memref<1x1x1xf32, #tpu.memory_space<vmem>>, vector<1x1x1xf32>
      tpu.vector_store %arg4[%c0_13, %c0_14, %c0_15], %22 {strides = array<i32>} : memref<1x1x1xf32, #tpu.memory_space<vmem>>, vector<1x1x1xf32>,
    } else {
    }
    return
  }
  func.func @transform_0(%arg0: i32, %arg1: i32) -> (i32, i32) {
    %c0_i32 = arith.constant 0 : i32
    return %arg0, %arg1 : i32, i32
  }
  func.func @transform_1(%arg0: i32, %arg1: i32) -> (i32, i32) {
    %c0_i32 = arith.constant 0 : i32
    return %arg0, %arg1 : i32, i32
  }
  func.func @transform_2(%arg0: i32, %arg1: i32) -> (i32, i32, i32) {
    %c0_i32 = arith.constant 0 : i32
    %c0_i32_0 = arith.constant 0 : i32
    %c0_i32_1 = arith.constant 0 : i32
    return %arg0, %c0_i32, %c0_i32_0 : i32, i32, i32
  }
}

</mosaic_0001>

<bundles_post_ra>
// kernel: tpu_custom_call.1
= control target key start
LH: loop header
LB: loop body
LE: loop exit
PB: predicated region body
PF: predicated region fallthrough
CT: control target
= control target key end

     0   :  { %7 = vsyncpa [#allocation4], 0  ;;  %s288_s0 = inlined_call_operand.hbm [shape: f32[8,256], index: 0, kind: input, shape index: {}]   ;;  %s289_s1 = inlined_call_operand.hbm [shape: f32[8,256], index: 1, kind: input, shape index: {}]   ;;  %s290_s2 = inlined_call_operand.hbm [shape: f32[1,1,1], index: 2, kind: output, shape index: {}]  }
   0x1   :  { %8 = vsyncpa [#allocation7], 0 }
   0x2   :  { %9 = vsyncpa [#allocation5], 0  ;;  %s224_s9 = smov [#allocation3]   ;;  %s225_s11 = smov [#allocation6]  }
   0x3   :  { %s16_s10 = sshll.u32 %s224_s9, 4  ;;  %s26_s12 = sshll.u32 %s225_s11, 4  ;;  %s17_s10 = int_to_ptr.vmem [resolvable:$true] %s16_s10  ;;  %s27_s12 = int_to_ptr.vmem [resolvable:$true] %s26_s12 }
   0x4   :  { %s152_s15 = scalar_lea.hbm %s288_s0, 256 }
   0x5   :  { %p153_p0 = scmp.ne.s32.totalorder %s288_s0, %s152_s15  ;;  %p156_p1 = scmp.lt.u32.totalorder %s152_s15, %s288_s0 }
   0x7   :  { %p158_p2 = pnand %p156_p1, %p153_p0 }
   0x9   :  { %161 = shalt.err (!%p158_p2)
}
   0xa   :  { %s162_s20 = scalar_lea.vmem %s17_s10, 256  ;;  %p167_p4 = scmp.lt.s32.totalorder %s17_s10, %s17_s10 }
   0xb   :  { %p163_p3 = scmp.ne.s32.totalorder %s17_s10, %s162_s20  ;;  %p168_p5 = scmp.lt.s32.totalorder %s162_s20, %s162_s20 }
   0xd   :  { %p169_p6 = por %p168_p5, %p167_p4 }
   0xf   :  { %p170_p7 = pnand %p169_p6, %p163_p3 }
  0x11   :  { %173 = shalt.err (!%p170_p7)
}
  0x12   :  { %19 = dma.hbm_to_vmem [thread:$0]  %s288_s0, 256, %s17_s10, [#allocation4]  }
  0x13   :  { %s174_s25 = scalar_lea.hbm %s289_s1, 256 }
  0x14   :  { %p175_p8 = scmp.ne.s32.totalorder %s289_s1, %s174_s25  ;;  %p178_p9 = scmp.lt.u32.totalorder %s174_s25, %s289_s1 }
  0x16   :  { %p180_p10 = pnand %p178_p9, %p175_p8 }
  0x18   :  { %183 = shalt.err (!%p180_p10)
}
  0x19   :  { %s184_s30 = scalar_lea.vmem %s27_s12, 256  ;;  %p189_p12 = scmp.lt.s32.totalorder %s27_s12, %s27_s12 }
  0x1a   :  { %p185_p11 = scmp.ne.s32.totalorder %s27_s12, %s184_s30  ;;  %p190_p13 = scmp.lt.s32.totalorder %s184_s30, %s184_s30 }
  0x1c   :  { %p191_p0 = por %p190_p13, %p189_p12 }
  0x1e   :  { %p192_p1 = pnand %p191_p0, %p185_p11 }
  0x20   :  { %195 = shalt.err (!%p192_p1)
}
  0x21   :  { %29 = dma.hbm_to_vmem [thread:$0]  %s289_s1, 256, %s27_s12, [#allocation7]  }
  0x22   :  { %218 = dma.done.wait [#allocation4], 256  }
  0x23   :  { %219 = vsyncadd [#allocation4], 4294967040 }
  0x24   :  { %220 = dma.done.wait [#allocation7], 256  }
  0x25   :  { %221 = vsyncadd [#allocation7], 4294967040  ;;  %v40_v0 = vlaneseq  ;;  %v226_v2 = vmov 0.0   ;;  %v45_v3 = vld [vmem:[#allocation3] sm:$0xff]  ;;  %v46_v4 = vld [vmem:[#allocation3 + $0x8] sm:$0xff]  ;;  %vm109_vm1 = vcmask 1040384  }
  0x26   :  { %v50_v5 = vmul.f32 1.442695, %v45_v3  ;;  %v52_v6 = vmul.f32 1.442695, %v46_v4  ;;  %v47_v7 = vld [vmem:[#allocation6] sm:$0xff]  ;;  %v48_v8 = vld [vmem:[#allocation6 + $0x8] sm:$0xff] }
  0x27   :  { %vm268_vm0 = vcmp.lt.s32.totalorder %v40_v0, 256  ;;  %v54_v9 = vsub.f32 %v45_v3, %v47_v7  ;;  %v55_v10 = vsub.f32 %v46_v4, %v48_v8  ;;  %v227_v19 = vmov 1966171168   ;;  %s228_s1 = smov [#allocation8]  }
  0x28   :  { %44 = vst.msk [vmem:[#allocation2] sm:$0x3] %vm268_vm0, %v226_v2  ;;  %148 = vpow2.f32 %v50_v5  ;;  %v74_v20 = vunpack.c.l.s4 %v227_v19  ;;  %v77_v26 = vshrl.u32 %v40_v0, 7  ;;  %s131_s4 = sshll.u32 %s228_s1, 4  ;;  %vm123_vm2 = vcmask 0   ;;  %s132_s4 = int_to_ptr.vmem [resolvable:$true] %s131_s4 }
  0x29   :  { %150 = vpow2.f32 %v52_v6  ;;  %s196_s6 = scalar_lea.vmem %s132_s4, 16  ;;  %s200_s7 = scalar_lea.vmem %s132_s4, 32 }
  0x2a   :  { %v75_v25 = vunpack.c.0.s8 %v74_v20  ;;  %v101_v37 = vsub.s32 0, %v77_v26  ;;  %v105_v38 = vsub.s32 1, %v77_v26  ;;  %p197_p2 = scmp.ne.s32.totalorder %s132_s4, %s196_s6  ;;  %p201_p3 = scmp.lt.s32.totalorder %s132_s4, %s132_s4 }
  0x2b   :  { %p202_p4 = scmp.lt.s32.totalorder %s200_s7, %s196_s6 }
  0x2c   :  { %v78_v31 = vsub.s32 %v75_v25, %v77_v26 }
  0x2d   :  { %p203_p5 = por %p202_p4, %p201_p3 }
  0x2f   :  { %v49_v34 = vld [vmem:[#allocation2] sm:$0x3]  ;;  %p204_p6 = pnand %p203_p5, %p197_p2 }
  0x32   :  { %v149_v11 = vpop.eup %148 }
  0x33   :  { %v151_v12 = vpop.eup %150  ;;  %v56_v13 = vmul.f32 %v149_v11, %v54_v9 }
  0x34   :  { %v57_v14 = vmul.f32 %v151_v12, %v55_v10 }
  0x35   :  { %v58_v15 = vrot.slane %v56_v13, 4 }
  0x36   :  { %v64_v16 = vrot.slane %v57_v14, 4 }
  0x37   :  { %v59_v17 = vadd.f32 %v58_v15, %v56_v13 }
  0x38   :  { %v65_v18 = vadd.f32 %v64_v16, %v57_v14 }
  0x39   :  { %v60_v21 = vrot.slane %v59_v17, 2 }
  0x3a   :  { %v66_v22 = vrot.slane %v65_v18, 2 }
  0x3b   :  { %v61_v23 = vadd.f32 %v60_v21, %v59_v17 }
  0x3c   :  { %v67_v24 = vadd.f32 %v66_v22, %v65_v18 }
  0x3d   :  { %v62_v27 = vrot.slane %v61_v23, 1 }
  0x3e   :  { %v68_v28 = vrot.slane %v67_v24, 1 }
  0x3f   :  { %v63_v29 = vadd.f32 %v62_v27, %v61_v23 }
  0x40   :  { %v69_v30 = vadd.f32 %v68_v28, %v67_v24 }
  0x42   :  { %v72_v32 = vcombine.low %v63_v29, %v69_v30 }
  0x44   :  { %v79_v33 = vrot.slane %v72_v32, %v78_v31 }
  0x46   :  { %v86_v35 = vrot.slane %v79_v33, %v78_v31 }
  0x48   :  { %v88_v36 = vadd.f32 %v86_v35, %v49_v34 }
  0x4a   :  { %93 = vst.msk [vmem:[#allocation2] sm:$0x3] %vm268_vm0, %v88_v36 }
  0x51   :  { %v97_v39 = vld [vmem:[#allocation2] sm:$0x3] }
  0x52   :  { %v102_v40 = vrot.slane %v97_v39, %v101_v37  ;;  %v106_v41 = vrot.slane %v97_v39, %v105_v38 }
  0x54   :  { %v110_v42 = vsel %vm109_vm1, %v102_v40, 0.0  ;;  %v111_v43 = vsel %vm109_vm1, %v106_v41, 0.0 }
  0x55   :  { %v112_v44 = vadd.f32 %v111_v43, %v110_v42 }
  0x57   :  { %113 = vadd.xlane.f32.xlu0 %v112_v44 }
  0xe4   :  { %v114_v45 = vpop.xlane.xlu0 %113 }
  0xe5   :  { %v115_v46 = vrot.slane %v114_v45, 4 }
  0xe7   :  { %v116_v47 = vadd.f32 %v115_v46, %v114_v45 }
  0xe9   :  { %v117_v48 = vrot.slane %v116_v47, 2 }
  0xeb   :  { %v118_v49 = vadd.f32 %v117_v48, %v116_v47 }
  0xed   :  { %v119_v50 = vrot.slane %v118_v49, 1 }
  0xef   :  { %v120_v51 = vadd.f32 %v119_v50, %v118_v49 }
  0xf1   :  { %141 = vpush %v120_v51 }
 0x122   :  { %s142_s5 = spop %141 }
 0x123   :  { %v122_v52 = vstv %s142_s5 }
 0x124   :  { %124 = vst.msk [vmem:[#allocation8] sm:$0x1] %vm123_vm2, %v122_v52 }
 0x125   :  { %207 = shalt.err (!%p204_p6)
}
 0x126   :  { %s208_s10 = scalar_lea.hbm %s290_s2, 16 }
 0x127   :  { %p209_p7 = scmp.ne.s32.totalorder %s290_s2, %s208_s10  ;;  %p212_p8 = scmp.lt.u32.totalorder %s208_s10, %s290_s2 }
 0x129   :  { %p214_p9 = pnand %p212_p8, %p209_p7 }
 0x12b   :  { %217 = shalt.err (!%p214_p9)
}
 0x12c   :  { %134 = dma.vmem_to_hbm [thread:$0]  %s132_s4, 16, %s290_s2, [#allocation5]  }
 0x12d   :  { %222 = dma.done.wait [#allocation5], 16  }
 0x12e   :  { %223 = vsyncadd [#allocation5], 4294967280 }
 0x12f   :  { %138 = vsyncpa [#allocation4], 1 }
 0x130   :  { %139 = vsyncpa [#allocation7], 1 }
 0x131   :  { %140 = vsyncpa [#allocation5], 1 }

</bundles_post_ra>
